<compile_context>
chip_gen: v7x
topology: tpu7x:2x2x1
jax: 0.10.0
libtpu: 0.0.40
codegen_flags: <defaults>
</compile_context>

<pallas_src>
import functools

import jax
import jax.numpy as jnp
from jax.experimental import pallas as pl
from jax.experimental.pallas import tpu as pltpu

POS_WEIGHT = 0.7
NEG_WEIGHT = 0.3

LANES = 128      # lane width
SUBLANES = 8     # sublane tile
TM_MAX = 2048    # max rows per grid step (1 MiB per f32 input block)
NUM_SPLITS = 2   # leading "parallel" grid axis -> per-TensorCore partial sums


def _wbce_kernel(p_ref, t_ref, o_ref, acc_ref, *,
                 pos_weight, neg_weight, tm, steps_per_split,
                 last_data_row, tail, rows_fully_valid):
    c = pl.program_id(0)           # split index (a TensorCore on 2-TC chips)
    i = pl.program_id(1)           # step within the split
    g = c * steps_per_split + i    # global (unclamped) block index

    @pl.when(i == 0)
    def _():
        acc_ref[...] = jnp.zeros_like(acc_ref)

    p = p_ref[...].astype(jnp.float32)
    t = t_ref[...].astype(jnp.float32)

    # elementwise weighted BCE: -w_p * t * log(p) - w_n * (1 - t) * log(1 - p)
    # (raw log, no clamping, to match the PyTorch module exactly)
    loss = (-pos_weight * t * jnp.log(p)
            - neg_weight * (1.0 - t) * jnp.log(1.0 - p))

    # Does this block contain any padded / out-of-bounds rows?  (scalar test;
    # steady-state blocks take the mask-free path)
    needs_mask = (g + 1) * tm > rows_fully_valid

    @pl.when(jnp.logical_not(needs_mask))
    def _():
        acc_ref[...] += loss.reshape(-1, SUBLANES, LANES).sum(axis=0)

    @pl.when(needs_mask)
    def _():
        # row/col mask (avoids flat-index int32 overflow for huge tensors)
        row = jax.lax.broadcasted_iota(jnp.int32, loss.shape, 0) + g * tm
        col = jax.lax.broadcasted_iota(jnp.int32, loss.shape, 1)
        valid = (row < last_data_row) | ((row == last_data_row) & (col < tail))
        masked = jnp.where(valid, loss, 0.0)   # select: kills NaN/inf in pads
        acc_ref[...] += masked.reshape(-1, SUBLANES, LANES).sum(axis=0)

    @pl.when(i == pl.num_programs(1) - 1)
    def _():
        o_ref[0] = acc_ref[...]    # per-split partial sum; reduced in wrapper


def weighted_bce_loss(probs, targets,
                      pos_weight=POS_WEIGHT, neg_weight=NEG_WEIGHT):
    """Mean of -pos_w*t*log(p) - neg_w*(1-t)*log(1-p) over all elements."""
    assert probs.shape == targets.shape
    n = probs.size
    assert n > 0

    # Flatten; pad only the tiny tail (< 8*128 elements) so rows are a
    # multiple of 8 lanes-by-128.  Keep original dtype (cast in-kernel).
    block_elems = SUBLANES * LANES
    n_pad_total = pl.cdiv(n, block_elems) * block_elems
    pad = n_pad_total - n

    p_flat = probs.reshape(-1)
    t_flat = targets.reshape(-1)
    if pad:
        # 0.5 keeps log() finite in the pad; padded loss is masked in-kernel.
        p_flat = jnp.pad(p_flat, (0, pad), constant_values=0.5)
        t_flat = jnp.pad(t_flat, (0, pad), constant_values=0.0)

    n_rows = n_pad_total // LANES            # multiple of 8
    p2 = p_flat.reshape(n_rows, LANES)
    t2 = t_flat.reshape(n_rows, LANES)

    tm = min(TM_MAX, n_rows)                 # multiple of 8 either way
    total_steps = pl.cdiv(n_rows, tm)
    steps_per_split = pl.cdiv(total_steps, NUM_SPLITS)

    last_data_row = (n - 1) // LANES
    tail = n - last_data_row * LANES         # valid lanes in last data row
    rows_fully_valid = n // LANES            # rows with no padding at all

    kernel = functools.partial(
        _wbce_kernel,
        pos_weight=float(pos_weight), neg_weight=float(neg_weight),
        tm=tm, steps_per_split=steps_per_split,
        last_data_row=last_data_row, tail=tail,
        rows_fully_valid=rows_fully_valid)

    def in_map(c, i):
        # Clamp: grid overhang re-reads the last real block (fully masked).
        return (jnp.minimum(c * steps_per_split + i, total_steps - 1), 0)

    partials = pl.pallas_call(
        kernel,
        out_shape=jax.ShapeDtypeStruct((NUM_SPLITS, SUBLANES, LANES),
                                       jnp.float32),
        grid_spec=pltpu.PrefetchScalarGridSpec(
            num_scalar_prefetch=0,
            grid=(NUM_SPLITS, steps_per_split),
            in_specs=[
                pl.BlockSpec((tm, LANES), in_map),
                pl.BlockSpec((tm, LANES), in_map),
            ],
            out_specs=pl.BlockSpec((1, SUBLANES, LANES),
                                   lambda c, i: (c, 0, 0)),
            scratch_shapes=[pltpu.VMEM((SUBLANES, LANES), jnp.float32)],
        ),
        compiler_params=pltpu.CompilerParams(
            dimension_semantics=("parallel", "arbitrary")),
    )(p2, t2)

    # Tiny final reduce + mean in plain JAX.
    return jnp.sum(partials) / jnp.float32(n)


def _reference(probs, targets, pw=POS_WEIGHT, nw=NEG_WEIGHT):
    return jnp.mean(-pw * targets * jnp.log(probs)
                    - nw * (1.0 - targets) * jnp.log(1.0 - probs))


if __name__ == "__main__":
    key = jax.random.PRNGKey(0)

    # Case 1: small NCHW input, size a multiple of 128 (mask-free steady path).
    k1, k2, k3, k4 = jax.random.split(key, 4)
    shape = (2, 4, 16, 16)
    probs = jax.nn.sigmoid(jax.random.normal(k1, shape, dtype=jnp.float32))
    targets = (jax.random.uniform(k2, shape) > 0.5).astype(jnp.float32)

    loss = jax.block_until_ready(weighted_bce_loss(probs, targets))
    ref = _reference(probs, targets)
    assert jnp.allclose(loss, ref, rtol=1e-5, atol=1e-6), (loss, ref)

    # Case 2: ragged size (not a multiple of 128) exercising the masked tail.
    shape2 = (2, 3, 15, 17)
    probs2 = jax.nn.sigmoid(jax.random.normal(k3, shape2, dtype=jnp.float32))
    targets2 = (jax.random.uniform(k4, shape2) > 0.5).astype(jnp.float32)

    loss2 = jax.block_until_ready(weighted_bce_loss(probs2, targets2))
    ref2 = _reference(probs2, targets2)
    assert jnp.allclose(loss2, ref2, rtol=1e-5, atol=1e-6), (loss2, ref2)

    print("KERNEL_OK")
</pallas_src>

<mosaic_0001>
module attributes {stable_mosaic.version = 11 : i64} {
  func.func @_wbce_kernel(%arg0: i32, %arg1: i32, %arg2: memref<16x128xf32, #tpu.memory_space<vmem>>, %arg3: memref<16x128xf32, #tpu.memory_space<vmem>>, %arg4: memref<1x8x128xf32, #tpu.memory_space<vmem>>, %arg5: memref<8x128xf32, #tpu.memory_space<vmem>>) attributes {dimension_semantics = [#tpu.dimension_semantics<parallel>, #tpu.dimension_semantics<arbitrary>], iteration_bounds = array<i64: 2, 1>, scalar_prefetch = 0 : i64, scratch_operands = 1 : i64, tpu.core_type = #tpu.core_type<tc>, window_params = [{transform_indices = @transform_0, window_bounds = array<i64: 16, 128>}, {transform_indices = @transform_1, window_bounds = array<i64: 16, 128>}, {transform_indices = @transform_2, window_bounds = array<i64: 1, 8, 128>}]} {
    %c1_i32 = arith.constant 1 : i32
    %0 = arith.muli %arg0, %c1_i32 : i32
    %1 = arith.addi %0, %arg1 : i32
    %c0_i32 = arith.constant 0 : i32
    %2 = arith.cmpi eq, %arg1, %c0_i32 : i32
    %3 = arith.extui %2 : i1 to i32
    %c0_i32_0 = arith.constant 0 : i32
    %4 = arith.cmpi ne, %3, %c0_i32_0 : i32
    scf.if %4 {
      %cst_13 = arith.constant 0.000000e+00 : f32
      %31 = vector.broadcast %cst_13 : f32 to vector<8x128xf32>
      %c0_14 = arith.constant 0 : index
      %c0_15 = arith.constant 0 : index
      %32 = vector.load %arg5[%c0_14, %c0_15] : memref<8x128xf32, #tpu.memory_space<vmem>>, vector<8x128xf32>
      tpu.vector_store %arg5[%c0_14, %c0_15], %31 {strides = array<i32>} : memref<8x128xf32, #tpu.memory_space<vmem>>, vector<8x128xf32>,
    } else {
    }
    %c0 = arith.constant 0 : index
    %c0_1 = arith.constant 0 : index
    %5 = vector.load %arg2[%c0, %c0_1] : memref<16x128xf32, #tpu.memory_space<vmem>>, vector<16x128xf32>
    %c0_2 = arith.constant 0 : index
    %c0_3 = arith.constant 0 : index
    %6 = vector.load %arg3[%c0_2, %c0_3] : memref<16x128xf32, #tpu.memory_space<vmem>>, vector<16x128xf32>
    %cst = arith.constant -0.699999988 : f32
    %7 = vector.broadcast %cst : f32 to vector<16x128xf32>
    %8 = arith.mulf %7, %6 : vector<16x128xf32>
    %9 = math.log %5 : vector<16x128xf32>
    %10 = arith.mulf %8, %9 : vector<16x128xf32>
    %cst_4 = arith.constant 1.000000e+00 : f32
    %11 = vector.broadcast %cst_4 : f32 to vector<16x128xf32>
    %12 = arith.subf %11, %6 : vector<16x128xf32>
    %cst_5 = arith.constant 3.000000e-01 : f32
    %13 = vector.broadcast %cst_5 : f32 to vector<16x128xf32>
    %14 = arith.mulf %13, %12 : vector<16x128xf32>
    %cst_6 = arith.constant 1.000000e+00 : f32
    %15 = vector.broadcast %cst_6 : f32 to vector<16x128xf32>
    %16 = arith.subf %15, %5 : vector<16x128xf32>
    %17 = math.log %16 : vector<16x128xf32>
    %18 = arith.mulf %14, %17 : vector<16x128xf32>
    %19 = arith.subf %10, %18 : vector<16x128xf32>
    %c1_i32_7 = arith.constant 1 : i32
    %20 = arith.addi %1, %c1_i32_7 : i32
    %c16_i32 = arith.constant 16 : i32
    %21 = arith.muli %20, %c16_i32 : i32
    %c16_i32_8 = arith.constant 16 : i32
    %22 = arith.cmpi sgt, %21, %c16_i32_8 : i32
    %true = arith.constant true
    %23 = arith.xori %22, %true : i1
    %24 = arith.extui %23 : i1 to i32
    %c0_i32_9 = arith.constant 0 : i32
    %25 = arith.cmpi ne, %24, %c0_i32_9 : i32
    scf.if %25 {
      %c0_13 = arith.constant 0 : index
      %c0_14 = arith.constant 0 : index
      %31 = vector.load %arg5[%c0_13, %c0_14] : memref<8x128xf32, #tpu.memory_space<vmem>>, vector<8x128xf32>
      %32 = vector.shape_cast %19 : vector<16x128xf32> to vector<2x8x128xf32>
      %cst_15 = arith.constant dense<0.000000e+00> : vector<8x128xf32>
      %33 = vector.multi_reduction <add>, %32, %cst_15 [0] : vector<2x8x128xf32> to vector<8x128xf32>
      %34 = arith.addf %31, %33 : vector<8x128xf32>
      %c0_16 = arith.constant 0 : index
      %c0_17 = arith.constant 0 : index
      %35 = vector.load %arg5[%c0_16, %c0_17] : memref<8x128xf32, #tpu.memory_space<vmem>>, vector<8x128xf32>
      tpu.vector_store %arg5[%c0_16, %c0_17], %34 {strides = array<i32>} : memref<8x128xf32, #tpu.memory_space<vmem>>, vector<8x128xf32>,
    } else {
    }
    %26 = arith.extui %22 : i1 to i32
    %c0_i32_10 = arith.constant 0 : i32
    %27 = arith.cmpi ne, %26, %c0_i32_10 : i32
    scf.if %27 {
      %31 = tpu.iota {dimensions = array<i32: 0>} : vector<16x128xi32>
      %c16_i32_13 = arith.constant 16 : i32
      %32 = arith.muli %1, %c16_i32_13 : i32
      %33 = vector.broadcast %32 : i32 to vector<16x128xi32>
      %34 = arith.addi %31, %33 : vector<16x128xi32>
      %35 = tpu.iota {dimensions = array<i32: 1>} : vector<16x128xi32>
      %c15_i32 = arith.constant 15 : i32
      %36 = vector.broadcast %c15_i32 : i32 to vector<16x128xi32>
      %37 = arith.cmpi slt, %34, %36 : vector<16x128xi32>
      %c15_i32_14 = arith.constant 15 : i32
      %38 = vector.broadcast %c15_i32_14 : i32 to vector<16x128xi32>
      %39 = arith.cmpi eq, %34, %38 : vector<16x128xi32>
      %c128_i32 = arith.constant 128 : i32
      %40 = vector.broadcast %c128_i32 : i32 to vector<16x128xi32>
      %41 = arith.cmpi slt, %35, %40 : vector<16x128xi32>
      %42 = arith.andi %39, %41 : vector<16x128xi1>
      %43 = arith.ori %37, %42 : vector<16x128xi1>
      %cst_15 = arith.constant 0.000000e+00 : f32
      %44 = vector.broadcast %cst_15 : f32 to vector<16x128xf32>
      %45 = arith.select %43, %19, %44 : vector<16x128xi1>, vector<16x128xf32>
      %c0_16 = arith.constant 0 : index
      %c0_17 = arith.constant 0 : index
      %46 = vector.load %arg5[%c0_16, %c0_17] : memref<8x128xf32, #tpu.memory_space<vmem>>, vector<8x128xf32>
      %47 = vector.shape_cast %45 : vector<16x128xf32> to vector<2x8x128xf32>
      %cst_18 = arith.constant dense<0.000000e+00> : vector<8x128xf32>
      %48 = vector.multi_reduction <add>, %47, %cst_18 [0] : vector<2x8x128xf32> to vector<8x128xf32>
      %49 = arith.addf %46, %48 : vector<8x128xf32>
      %c0_19 = arith.constant 0 : index
      %c0_20 = arith.constant 0 : index
      %50 = vector.load %arg5[%c0_19, %c0_20] : memref<8x128xf32, #tpu.memory_space<vmem>>, vector<8x128xf32>
      tpu.vector_store %arg5[%c0_19, %c0_20], %49 {strides = array<i32>} : memref<8x128xf32, #tpu.memory_space<vmem>>, vector<8x128xf32>,
    } else {
    }
    %c0_i32_11 = arith.constant 0 : i32
    %28 = arith.cmpi eq, %arg1, %c0_i32_11 : i32
    %29 = arith.extui %28 : i1 to i32
    %c0_i32_12 = arith.constant 0 : i32
    %30 = arith.cmpi ne, %29, %c0_i32_12 : i32
    scf.if %30 {
      %c0_13 = arith.constant 0 : index
      %c0_14 = arith.constant 0 : index
      %31 = vector.load %arg5[%c0_13, %c0_14] : memref<8x128xf32, #tpu.memory_space<vmem>>, vector<8x128xf32>
      %c0_15 = arith.constant 0 : index
      %c0_16 = arith.constant 0 : index
      %c0_17 = arith.constant 0 : index
      %32 = vector.load %arg4[%c0_15, %c0_16, %c0_17] : memref<1x8x128xf32, #tpu.memory_space<vmem>>, vector<1x8x128xf32>
      %33 = vector.shape_cast %32 : vector<1x8x128xf32> to vector<8x128xf32>
      %34 = vector.shape_cast %31 : vector<8x128xf32> to vector<1x8x128xf32>
      tpu.vector_store %arg4[%c0_15, %c0_16, %c0_17], %34 {strides = array<i32>} : memref<1x8x128xf32, #tpu.memory_space<vmem>>, vector<1x8x128xf32>,
    } else {
    }
    return
  }
  func.func @transform_0(%arg0: i32, %arg1: i32) -> (i32, i32) {
    %c1_i32 = arith.constant 1 : i32
    %0 = arith.muli %arg0, %c1_i32 : i32
    %1 = arith.addi %0, %arg1 : i32
    %c0_i32 = arith.constant 0 : i32
    %2 = arith.minsi %1, %c0_i32 : i32
    %c0_i32_0 = arith.constant 0 : i32
    %c0_i32_1 = arith.constant 0 : i32
    return %2, %c0_i32_0 : i32, i32
  }
  func.func @transform_1(%arg0: i32, %arg1: i32) -> (i32, i32) {
    %c1_i32 = arith.constant 1 : i32
    %0 = arith.muli %arg0, %c1_i32 : i32
    %1 = arith.addi %0, %arg1 : i32
    %c0_i32 = arith.constant 0 : i32
    %2 = arith.minsi %1, %c0_i32 : i32
    %c0_i32_0 = arith.constant 0 : i32
    %c0_i32_1 = arith.constant 0 : i32
    return %2, %c0_i32_0 : i32, i32
  }
  func.func @transform_2(%arg0: i32, %arg1: i32) -> (i32, i32, i32) {
    %c0_i32 = arith.constant 0 : i32
    %c0_i32_0 = arith.constant 0 : i32
    %c0_i32_1 = arith.constant 0 : i32
    return %arg0, %c0_i32, %c0_i32_0 : i32, i32, i32
  }
}

</mosaic_0001>

<bundles_post_ra>
// kernel: tpu_custom_call.1
= control target key start
LH: loop header
LB: loop body
LE: loop exit
PB: predicated region body
PF: predicated region fallthrough
CT: control target
= control target key end

     0   :  { %7 = vsyncpa [#allocation4], 0  ;;  %s965_s0 = inlined_call_operand.hbm [shape: f32[16,128], index: 0, kind: input, shape index: {}]   ;;  %s966_s1 = inlined_call_operand.hbm [shape: f32[16,128], index: 1, kind: input, shape index: {}]   ;;  %s967_s2 = inlined_call_operand.hbm [shape: f32[2,8,128], index: 2, kind: output, shape index: {}]  }
   0x1   :  { %9 = vsyncpa [#allocation4 + $0x1], 0 }
   0x2   :  { %10 = vsyncpa [#allocation7], 0 }
   0x3   :  { %12 = vsyncpa [#allocation7 + $0x1], 0 }
   0x4   :  { %13 = vsyncpa [#allocation5], 0 }
   0x5   :  { %15 = vsyncpa [#allocation5 + $0x1], 0  ;;  %s748_s9 = smov 0   ;;  %s750_s10 = smov 0  }
   0x6   :  { %s752_s11 = smov 0   ;;  %s754_s12 = smov 0  }
   0x7   :  { %s756_s13 = smov 0   ;;  %s758_s14 = smov 0  }
   0x8   :  { %s760_s15 = smov 0   ;;  %s762_s16 = smov 0  }
   0x9 LB: > { %s430_s17 = sadd.s32 4294967295, %s725_s16   ;;  %s431_s18 = sadd.s32 4294967294, %s725_s16   ;;  %s725_s16 = sphi %s762_s16, %s21_s16   ;;  %s721_s15 = sphi %s760_s15, %s986_s15   ;;  %s717_s14 = sphi %s758_s14, %s985_s14   ;;  %s713_s13 = sphi %s756_s13, %s955_s13   ;;  %s709_s12 = sphi %s754_s12, %s984_s12   ;;  %s705_s11 = sphi %s752_s11, %s983_s11   ;;  %s701_s10 = sphi %s750_s10, %s982_s10   ;;  %s697_s9 = sphi %s748_s9, %s981_s9  }
   0xa   : > { %s33_s19 = sadd.s32 1, %s721_s15  ;;  %p694_p1 = scmp.ne.s32.totalorder %s713_s13, 0 }
   0xb   : > { %p35_p0 = scmp.ge.s32.totalorder %s33_s19, 2  ;;  %p54_p2 = scmp.eq.s32.totalorder %s725_s16, 0 }
   0xc   : > { %p59_p3 = scmp.ne.s32.totalorder %s713_s13, %s709_s12  ;;  %p60_p5 = scmp.eq.s32.totalorder %s430_s17, 0 }
   0xd   : > { %s988_s19 = smov (%p35_p0, %s33_s19), 0  ;;  %p794_p4 = por %p694_p1, %p54_p2 }
   0xe   : > { %p798_p6 = por %p60_p5, %p59_p3  ;;  %s101_s22 = ssub.s32 %s721_s15, %s988_s19 }
   0xf   : > { %p102_p7 = scmp.eq.s32.totalorder %s101_s22, 0  ;;  %s104_s23 = sadd.s32 1, %s705_s11 }
  0x10   : > { %s971_s21 = scalar_select %p798_p6, 1, 0 }
  0x11   : > { %s806_s24 = scalar_select %p102_p7, %s705_s11, %s104_s23  }
  0x12   : > { %p114_p8 = scmp.ne.s32.totalorder %s705_s11, %s701_s10  ;;  %p115_p9 = scmp.eq.s32.totalorder %s430_s17, 1 }
  0x13   : > { %p120_p10 = scmp.ne.s32.totalorder %s701_s10, %s697_s9  ;;  %p121_p11 = scmp.eq.s32.totalorder %s431_s18, 1 }
  0x14   : > { %p812_p12 = por %p115_p9, %p114_p8  ;;  %p473_p1 = scmp.lt.s32.totalorder %s725_s16, 2 }
  0x15   : > { %p817_p0 = por %p121_p11, %p120_p10  ;;  %s727_s27 = smov [#allocation3]  }
  0x16   : > { %s972_s25 = scalar_select %p812_p12, 1, 0 }
  0x17   : > { %s973_s26 = scalar_select %p817_p0, 1, 0 }
  0x18   : > { %s155_s28 = sshll.u32 %s727_s27, 4  ;;  %p824_p2 = pnand %p473_p1, %p794_p4  ;;  %s156_s28 = int_to_ptr.vmem [resolvable:$true] %s155_s28 }
  0x19   : > { %s558_s4 = scalar_lea.hbm %s965_s0, 256 }
  0x1a   : > { %p559_p3 = scmp.ne.s32.totalorder %s965_s0, %s558_s4  ;;  %p560_p5 = pneg %p824_p2 }
  0x1b   : > { %p565_p8 = scmp.lt.u32.totalorder %s558_s4, %s558_s4  ;;  %p567_p9 = scmp.lt.u32.totalorder %s558_s4, %s965_s0 }
  0x1c   : > { %p561_p7 = pnand %p560_p5, %p559_p3 }
  0x1d   : > { %p568_p10 = por %p567_p9, %p565_p8 }
  0x1e   : > { %p562_p4 = pneg %p561_p7 }
  0x20   : > { %p569_p11 = pnand %p568_p10, %p562_p4 }
  0x22   : > { %572 = shalt.err (!%p569_p11)
}
  0x23   : > { %s573_s12 = scalar_lea.vmem %s156_s28, 256  ;;  %s580_s17 = scalar_lea.vmem %s156_s28, 512 }
  0x24   : > { %p574_p1 = scmp.ne.s32.totalorder %s156_s28, %s573_s12  ;;  %p581_p12 = scmp.lt.s32.totalorder %s156_s28, %s156_s28 }
  0x25   : > { %p582_p6 = scmp.lt.s32.totalorder %s580_s17, %s573_s12 }
  0x26   : > { %p576_p13 = pnand %p574_p1, %p560_p5 }
  0x27   : > { %p583_p3 = por %p582_p6, %p581_p12 }
  0x28   : > { %p577_p0 = pneg %p576_p13 }
  0x2a   : > { %p584_p7 = pnand %p583_p3, %p577_p0 }
  0x2c   : > { %587 = shalt.err (!%p584_p7)
}
  0x2d   : > { %s728_s18 = smov 128   ;;  %s729_s20 = smov 8  }
  0x2e   : > { %465 = dma.hbm_to_vmem [thread:$0]  (!%p824_p2), %s965_s0, 256, %s156_s28, [#allocation4], %s728_s18, %s728_s18, %s729_s20  }
  0x2f   : > { %p440_p13 = scmp.ge.s32.totalorder %s725_s16, 1  ;;  %p187_p4 = scmp.lt.s32.totalorder %s725_s16, 3 }
  0x30   : > { %s730_s30 = smov [#allocation6]   ;;  %s588_s6 = scalar_lea.hbm %s966_s1, 256 }
  0x31   : > { %p855_p8 = pnand %p440_p13, %p187_p4  ;;  %s179_s3 = sshll.u32 %s730_s30, 4  ;;  %s180_s3 = int_to_ptr.vmem [resolvable:$true] %s179_s3 }
  0x32   : > { %p589_p6 = scmp.ne.s32.totalorder %s966_s1, %s588_s6  ;;  %p595_p9 = scmp.lt.u32.totalorder %s588_s6, %s588_s6 }
  0x33   : > { %s975_s27 = scalar_select %p855_p8, 1, 0 }
  0x34   : > { %p591_p12 = pnand %p589_p6, %p560_p5  ;;  %p597_p10 = scmp.lt.u32.totalorder %s588_s6, %s966_s1 }
  0x36   : > { %p592_p0 = pneg %p591_p12  ;;  %p598_p11 = por %p597_p10, %p595_p9 }
  0x38   : > { %p599_p1 = pnand %p598_p11, %p592_p0 }
  0x3a   : > { %602 = shalt.err (!%p599_p1)
}
  0x3b   : > { %s603_s17 = scalar_lea.vmem %s180_s3, 256  ;;  %s610_s22 = scalar_lea.vmem %s180_s3, 512 }
  0x3c   : > { %p604_p3 = scmp.ne.s32.totalorder %s180_s3, %s603_s17  ;;  %p611_p4 = scmp.lt.s32.totalorder %s180_s3, %s180_s3 }
  0x3d   : > { %p612_p8 = scmp.lt.s32.totalorder %s610_s22, %s603_s17 }
  0x3e   : > { %p606_p7 = pnand %p604_p3, %p560_p5 }
  0x3f   : > { %p613_p6 = por %p612_p8, %p611_p4 }
  0x40   : > { %p607_p13 = pneg %p606_p7 }
  0x42   : > { %p614_p12 = pnand %p613_p6, %p607_p13 }
  0x44   : > { %617 = shalt.err (!%p614_p12)
}
  0x45   : > { %468 = dma.hbm_to_vmem [thread:$0]  (!%p824_p2), %s966_s1, 256, %s180_s3, [#allocation7], %s728_s18, %s728_s18, %s729_s20  }
  0x46   : > { %p976_p0 = scmp.ne.s32.totalorder %s975_s27, 0 }
  0x47   : > { %s193_s4 = sand.u32 (!%p976_p0), 1, %s713_s13   ;;  %p977_p5 = scmp.ne.s32.totalorder (!%p976_p0), %s971_s21, 0 }
  0x48   : > { %191 = sbr.rel (%p976_p0) target bundleno = 150 (0x96), region = 28  ;;  %s441_s5 = sshll.u32 (!%p976_p0), %s193_s4, 4 }
  0x49   : > { %s194_s6 = scalar_lea.sflag (!%p976_p0), [#allocation4], %s193_s4  ;;  %s197_s7 = scalar_lea.vmem (!%p976_p0), [#allocation3], %s441_s5 }
  0x4f   : > { %683 = dma.done.wait (%p977_p5), %s194_s6, 256  }
  0x50   : > { %685 = vsyncadd (%p977_p5), %s194_s6, 4294967040  ;;  %s203_s29 = scalar_lea.sflag [#allocation7], %s193_s4  ;;  %s206_s8 = scalar_lea.vmem [#allocation6], %s441_s5 }
  0x51   : > { %687 = dma.done.wait (%p977_p5), %s203_s29, 256  }
  0x52   : > { %689 = vsyncadd (%p977_p5), %s203_s29, 4294967040  ;;  %s229_s18 = sand.u32 1, %s701_s10   ;;  %s454_s20 = sshll.u32 %s717_s14, 4  ;;  %v731_v0 = vmov 0.0   ;;  %v246_v1 = vld [vmem:[%s197_s7] sm:$0xff]  ;;  %v247_v2 = vld [vmem:[%s197_s7 + $0x8] sm:$0xff] }
  0x53   : > { %s897_s27 = sshll.u32 %s229_s18, 3  ;;  %245 = vst [vmem:[#allocation2] sm:$0xff] %v731_v0  ;;  %s901_s3 = sadd.s32 16, %s454_s20  ;;  %550 = vlog2.f32 %v246_v1  ;;  %v262_v3 = vsub.f32 1.0, %v246_v1  ;;  %v263_v4 = vsub.f32 1.0, %v247_v2  ;;  %v248_v5 = vld [vmem:[%s206_s8] sm:$0xff] }
  0x54   : > { %552 = vlog2.f32 %v247_v2  ;;  %v249_v6 = vld [vmem:[%s206_s8 + $0x8] sm:$0xff]  ;;  %v258_v7 = vsub.f32 1.0, %v248_v5  ;;  %v250_v9 = vmul.f32 -0.7, %v248_v5  ;;  %s231_s21 = scalar_lea.vmem [#allocation8], %s897_s27  ;;  %p445_p2 = scmp.gt.s32.totalorder %s901_s3, 16 }
  0x55   : > { %554 = vlog2.f32 %v262_v3  ;;  %v259_v8 = vsub.f32 1.0, %v249_v6  ;;  %v251_v11 = vmul.f32 -0.7, %v249_v6 }
  0x56   : > { %556 = vlog2.f32 %v263_v4  ;;  %v260_v14 = vmul.f32 0.3, %v258_v7 }
  0x57   : > { %v261_v17 = vmul.f32 0.3, %v259_v8 }
  0x5a   : > { %v279_v27 = vld [vmem:[#allocation2] sm:$0xff] (!%p445_p2) }
  0x5d   : > { %v551_v10 = vpop.eup %550 }
  0x5e   : > { %v553_v12 = vpop.eup %552  ;;  %v253_v13 = vmul.f32 0.6931472, %v551_v10 }
  0x5f   : > { %v555_v15 = vpop.eup %554  ;;  %v255_v16 = vmul.f32 0.6931472, %v553_v12  ;;  %278 = sbr.rel (%p445_p2) target bundleno = 108 (0x6c), region = 44 }
  0x60   : > { %v557_v18 = vpop.eup %556  ;;  %v256_v19 = vmul.f32 %v253_v13, %v250_v9  ;;  %v265_v20 = vmul.f32 0.6931472, %v555_v15 }
  0x61   : > { %v257_v21 = vmul.f32 %v255_v16, %v251_v11  ;;  %v267_v22 = vmul.f32 0.6931472, %v557_v18 }
  0x62   : > { %v268_v23 = vmul.f32 %v265_v20, %v260_v14 }
  0x63   : > { %v269_v24 = vmul.f32 %v267_v22, %v261_v17 }
  0x64   : > { %v270_v25 = vsub.f32 %v256_v19, %v268_v23 }
  0x65   : > { %v271_v26 = vsub.f32 %v257_v21, %v269_v24 }
  0x67   : > { %v280_v28 = vadd.f32 %v271_v26, %v270_v25 }
  0x69   : > { %v281_v29 = vadd.f32 %v280_v28, %v279_v27 }
  0x6b   : > { %282 = vst [vmem:[#allocation2] sm:$0xff] %v281_v29 }
  0x6c PF: > { %p446_p8 = scmp.le.s32.totalorder %s901_s3, 16 }
  0x6d   : > { %v286_v30 = vlaneseq (!%p446_p8)  ;;  %v290_v31 = vstv (!%p446_p8), %s454_s20 }
  0x6e   : > { %285 = sbr.rel (%p446_p8) target bundleno = 125 (0x7d), region = 48 }
  0x6f   : > { %v287_v32 = vshrl.u32 (!%p446_p8), %v286_v30, 7 }
  0x71   : > { %v288_v33 = vadd.s32 (!%p446_p8), 8, %v287_v32  ;;  %v291_v34 = vadd.s32 (!%p446_p8), %v290_v31, %v287_v32 }
  0x72   : > { %v306_v38 = vld [vmem:[#allocation2] sm:$0xff] (!%p446_p8) }
  0x73   : > { %v292_v35 = vadd.s32 (!%p446_p8), %v290_v31, %v288_v33  ;;  %vm295_vm0 = vcmp.lt.s32.totalorder (!%p446_p8), %v291_v34, 15  ;;  %vm297_vm1 = vcmp.eq.s32.totalorder (!%p446_p8), %v291_v34, 15 }
  0x74   : > { %vm302_vm2 = vmor (!%p446_p8), %vm295_vm0, %vm297_vm1 }
  0x75   : > { %vm296_vm3 = vcmp.lt.s32.totalorder %v292_v35, 15  ;;  %vm298_vm4 = vcmp.eq.s32.totalorder %v292_v35, 15  ;;  %v304_v36 = vsel %vm302_vm2, %v270_v25, 0.0 }
  0x76   : > { %vm303_vm5 = vmor %vm296_vm3, %vm298_vm4 }
  0x77   : > { %v305_v37 = vsel %vm303_vm5, %v271_v26, 0.0 }
  0x78   : > { %v307_v39 = vadd.f32 %v305_v37, %v304_v36 }
  0x7a   : > { %v308_v40 = vadd.f32 %v307_v39, %v306_v38 }
  0x7c   : > { %309 = vst [vmem:[#allocation2] sm:$0xff] %v308_v40 }
  0x7d PF: > { %s449_s28 = sshll.u32 %s717_s14, 7  ;;  %s329_s23 = sshll.u32 %s231_s21, 4  ;;  %s330_s23 = int_to_ptr.vmem [resolvable:$true] %s329_s23 }
  0x7e   : > { %s914_s22 = scalar_lea.hbm %s967_s2, %s449_s28  ;;  %s316_s30 = scalar_lea.sflag [#allocation5], %s229_s18 }
  0x7f   : > { %s618_s4 = scalar_lea.vmem %s330_s23, 128  ;;  %p978_p10 = scmp.ne.s32.totalorder %s972_s25, 0 }
  0x80   : > { %p619_p9 = scmp.ne.s32.totalorder %s330_s23, %s618_s4  ;;  %s732_s5 = smov [#allocation8]  }
  0x81   : > { %s622_s6 = sshll.u32 %s732_s5, 4  ;;  %s623_s6 = int_to_ptr.vmem [resolvable:$false] %s622_s6 }
  0x82   : > { %p620_p11 = pnand %p619_p9, %p978_p10  ;;  %s624_s14 = scalar_lea.vmem %s623_s6, 256 }
  0x83   : > { %v313_v41 = vld [vmem:[#allocation2] sm:$0xff]  ;;  %p625_p3 = scmp.lt.s32.totalorder %s330_s23, %s623_s6  ;;  %p626_p7 = scmp.lt.s32.totalorder %s624_s14, %s618_s4 }
  0x84   : > { %314 = vst [vmem:[%s231_s21] sm:$0xff] %v313_v41  ;;  %p621_p1 = pneg %p620_p11 }
  0x85   : > { %p627_p13 = por %p626_p7, %p625_p3 }
  0x87   : > { %p628_p4 = pnand %p627_p13, %p621_p1 }
  0x89   : > { %631 = shalt.err (!%p628_p4)
}
  0x8a   : > { %s632_s7 = scalar_lea.hbm %s914_s22, 128  ;;  %s636_s18 = scalar_lea.hbm %s967_s2, 256 }
  0x8b   : > { %p633_p6 = scmp.ne.s32.totalorder %s914_s22, %s632_s7  ;;  %p637_p5 = scmp.lt.u32.totalorder %s914_s22, %s967_s2 }
  0x8c   : > { %p638_p2 = scmp.lt.u32.totalorder %s636_s18, %s632_s7  ;;  %p640_p9 = scmp.lt.u32.totalorder %s632_s7, %s914_s22 }
  0x8d   : > { %p634_p12 = pnand %p633_p6, %p978_p10 }
  0x8e   : > { %p639_p8 = por %p638_p2, %p637_p5 }
  0x8f   : > { %p635_p0 = pneg %p634_p12 }
  0x90   : > { %p641_p11 = por %p640_p9, %p639_p8 }
  0x92   : > { %p642_p1 = pnand %p641_p11, %p635_p0 }
  0x94   : > { %645 = shalt.err (!%p642_p1)
}
  0x95   : > { %460 = dma.vmem_to_hbm [thread:$0]  (%p978_p10), %s330_s23, 128, %s914_s22, %s316_s30  }
  0x96 PF: > { %s341_s3 = sand.u32 1, %s697_s9   ;;  %p979_p3 = scmp.ne.s32.totalorder %s973_s26, 0 }
  0x97   : > { %p980_p7 = scmp.ge.s32.totalorder %s725_s16, 2  ;;  %s342_s21 = scalar_lea.sflag [#allocation5], %s341_s3 }
  0x99   : > { %p470_p13 = pnand %p980_p7, %p979_p3 }
  0x9b   : > { %691 = dma.done.wait (!%p470_p13), %s342_s21, 128  }
  0x9c   : > { %693 = vsyncadd (!%p470_p13), %s342_s21, 4294967168  ;;  %s21_s16 = sadd.s32 1, %s725_s16   ;;  %s981_s9 = smov %s701_s10 }
  0x9d   : > { %p18_p4 = scmp.ge.s32.totalorder %s21_s16, 4   ;;  %s982_s10 = smov %s705_s11 }
  0x9e   : > { %s983_s11 = smov %s806_s24  ;;  %s984_s12 = smov %s713_s13 }
  0x9f   : > { %s955_s13 = smov 0   ;;  %s985_s14 = smov %s721_s15 }
  0xa0   : > { %s986_s15 = smov %s988_s19  ;;  %20 = sbr.rel (!%p18_p4) target bundleno = 9 (0x9), region = 102 }
  0xa7   :  { %347 = vsyncpa [#allocation4], 1 }
  0xa8   :  { %349 = vsyncpa [#allocation4 + $0x1], 1 }
  0xa9   :  { %350 = vsyncpa [#allocation7], 1 }
  0xaa   :  { %352 = vsyncpa [#allocation7 + $0x1], 1 }
  0xab   :  { %353 = vsyncpa [#allocation5], 1 }
  0xac   :  { %355 = vsyncpa [#allocation5 + $0x1], 1 }

</bundles_post_ra>
